<compile_context>
chip_gen: v7x
topology: tpu7x:2x2x1
jax: 0.10.0
libtpu: 0.0.40
codegen_flags: <defaults>
</compile_context>

<pallas_src>
import functools

import jax
import jax.numpy as jnp
from jax.experimental import pallas as pl
from jax.experimental.pallas import tpu as pltpu


# --------------------------------------------------------------------------- #
# Fused kernel: chained (x @ W + b) -> activation for every layer.
# refs layout: (x_ref, w0, b0, w1, b1, ..., w_{n-1}, b_{n-1}, o_ref)
# --------------------------------------------------------------------------- #
def _fused_mlp_kernel(x_ref, *refs, acts, compute_dtype):
    o_ref = refs[-1]
    y = x_ref[...].astype(jnp.float32)
    for i, act in enumerate(acts):
        w = refs[2 * i][...]
        b = refs[2 * i + 1][...].astype(jnp.float32)
        # bf16 MXU operands, f32 accumulation; elementwise math stays f32.
        y = jnp.dot(y.astype(compute_dtype), w.astype(compute_dtype),
                    preferred_element_type=jnp.float32) + b
        if act == "relu":
            y = jnp.maximum(y, 0.0)
        elif act == "sigmoid":
            y = jax.nn.sigmoid(y)          # EUP transcendental, own VLIW slot
        elif act == "none":
            pass
        else:
            raise ValueError(f"invalid activation {act}")
    o_ref[...] = y.astype(o_ref.dtype)


def _pad_to_128(d):
    return max(128, ((d + 127) // 128) * 128)


def _round8(n):
    return ((n + 7) // 8) * 8


# --------------------------------------------------------------------------- #
# One-time parameter preparation (hoisted out of the forward path).
# --------------------------------------------------------------------------- #
def prepare_autoencoder(enc_params, dec_params, h_activation="relu",
                        o_activation="sigmoid", weight_dtype=jnp.bfloat16):
    """Pad/cast parameters once.  enc/dec params: lists of (W [in,out], b)."""
    params = list(enc_params) + list(dec_params)
    acts = tuple([h_activation] * (len(params) - 1) + [o_activation])
    dims = [params[0][0].shape[0]] + [w.shape[1] for (w, _) in params]
    # Input feature dim stays UNPADDED (x block uses the full array dim);
    # every other feature dim is padded to 128 lanes.
    pdims = tuple([dims[0]] + [_pad_to_128(d) for d in dims[1:]])

    padded = []
    for i, (w, b) in enumerate(params):
        wp = (jnp.zeros((pdims[i], pdims[i + 1]), weight_dtype)
              .at[:w.shape[0], :w.shape[1]].set(w.astype(weight_dtype)))
        bp = (jnp.zeros((1, pdims[i + 1]), jnp.float32)
              .at[:, :b.shape[-1]].set(b.reshape(1, -1).astype(jnp.float32)))
        padded += [wp, bp]
    return tuple(padded), pdims, acts, dims[-1]


# --------------------------------------------------------------------------- #
# Forward: single fused pallas_call over a batch-parallel grid.
# --------------------------------------------------------------------------- #
@functools.partial(
    jax.jit,
    static_argnames=("pdims", "acts", "out_dim", "block_batch",
                     "compute_dtype"))
def autoencoder_forward(x, padded_params, pdims, acts, out_dim,
                        block_batch=512, compute_dtype=jnp.bfloat16):
    B, Din = x.shape
    assert Din == pdims[0], "input feature dim mismatch"
    n_layers = len(acts)

    # Batch tile: multiple of 8 sublanes, capped at ceil(B/2) so the grid has
    # >= 2 steps when B >= 16 (lets v7x shard batch tiles across both TCs).
    TB = max(8, min(_round8(block_batch), _round8(pl.cdiv(B, 2))))
    Bp = pl.cdiv(B, TB) * TB
    if Bp != B:
        x = jnp.pad(x, ((0, Bp - B), (0, 0)))

    grid = (Bp // TB,)

    # Input: unpadded feature dim (block last dim == full array dim is legal).
    in_specs = [pl.BlockSpec((TB, Din), lambda g: (g, 0))]
    for i in range(n_layers):
        # Weights/biases: constant block index -> loaded once, VMEM-resident.
        in_specs.append(pl.BlockSpec((pdims[i], pdims[i + 1]),
                                     lambda g: (0, 0)))
        in_specs.append(pl.BlockSpec((1, pdims[i + 1]), lambda g: (0, 0)))
    # Lane-dense (128-wide) output tile -> unmasked vector stores.
    out_specs = pl.BlockSpec((TB, pdims[-1]), lambda g: (g, 0))

    w_bytes = sum(pdims[i] * pdims[i + 1] for i in range(n_layers)) \
        * jnp.dtype(compute_dtype).itemsize
    b_bytes = sum(pdims[i + 1] for i in range(n_layers)) * 4
    cost = pl.CostEstimate(
        flops=2 * Bp * sum(pdims[i] * pdims[i + 1] for i in range(n_layers)),
        transcendentals=Bp * pdims[-1],
        bytes_accessed=Bp * Din * 4 + w_bytes + b_bytes + Bp * pdims[-1] * 4,
    )

    out = pl.pallas_call(
        functools.partial(_fused_mlp_kernel, acts=acts,
                          compute_dtype=compute_dtype),
        out_shape=jax.ShapeDtypeStruct((Bp, pdims[-1]), x.dtype),
        grid=grid,
        in_specs=in_specs,
        out_specs=out_specs,
        compiler_params=pltpu.CompilerParams(
            dimension_semantics=("parallel",)),
        cost_estimate=cost,
    )(x, *padded_params)

    # Slice away batch / lane padding.
    return out[:B, :out_dim]


# --------------------------------------------------------------------------- #
# Parameter init mirroring nn.Linear shapes of the PyTorch module.
# --------------------------------------------------------------------------- #
def init_autoencoder_params(key, layers):
    rev = list(reversed(layers))
    enc, dec = [], []
    for i in range(len(layers) - 1):
        key, k1, k2, k3, k4 = jax.random.split(key, 5)
        bound_e = 1.0 / jnp.sqrt(layers[i])
        we = jax.random.uniform(k1, (layers[i], layers[i + 1]),
                                jnp.float32, -bound_e, bound_e)
        be = jax.random.uniform(k2, (1, layers[i + 1]),
                                jnp.float32, -bound_e, bound_e)
        enc.append((we, be))

        bound_d = 1.0 / jnp.sqrt(rev[i])
        wd = jax.random.uniform(k3, (rev[i], rev[i + 1]),
                                jnp.float32, -bound_d, bound_d)
        bd = jax.random.uniform(k4, (1, rev[i + 1]),
                                jnp.float32, -bound_d, bound_d)
        dec.append((wd, bd))
    return enc, dec


def autoencoder_forward_ref(x, enc_params, dec_params):
    # pure-JAX reference (f32) for correctness checking
    for (w, b) in enc_params:
        x = jnp.maximum(x @ w + b, 0.0)
    n = len(dec_params)
    for i, (w, b) in enumerate(dec_params):
        y = x @ w + b
        x = jax.nn.sigmoid(y) if i == n - 1 else jnp.maximum(y, 0.0)
    return x


if __name__ == "__main__":
    layers = [32, 16, 8]     # Autoencoder(layers=[32, 16, 8])
    batch = 12               # exercises both batch padding and a 2-step grid

    key = jax.random.PRNGKey(0)
    key, kx = jax.random.split(key)
    x = jax.random.uniform(kx, (batch, layers[0]), jnp.float32)

    enc_params, dec_params = init_autoencoder_params(key, layers)

    # One-time padding / bf16 cast of the parameters (outside the fwd path).
    padded_params, pdims, acts, out_dim = prepare_autoencoder(
        enc_params, dec_params)

    out = autoencoder_forward(x, padded_params, pdims, acts, out_dim)
    out = jax.block_until_ready(out)

    ref = autoencoder_forward_ref(x, enc_params, dec_params)
    assert out.shape == (batch, layers[0])
    # bf16 MXU operands (f32 accumulation) -> relaxed tolerance vs f32 ref.
    assert jnp.allclose(out, ref, atol=2e-2, rtol=2e-2)

    print("KERNEL_OK")
</pallas_src>

<mosaic_0001>
module attributes {stable_mosaic.version = 11 : i64} {
  func.func @_fused_mlp_kernel(%arg0: i32, %arg1: memref<8x32xf32, #tpu.memory_space<vmem>>, %arg2: memref<32x128xbf16, #tpu.memory_space<vmem>>, %arg3: memref<1x128xf32, #tpu.memory_space<vmem>>, %arg4: memref<128x128xbf16, #tpu.memory_space<vmem>>, %arg5: memref<1x128xf32, #tpu.memory_space<vmem>>, %arg6: memref<128x128xbf16, #tpu.memory_space<vmem>>, %arg7: memref<1x128xf32, #tpu.memory_space<vmem>>, %arg8: memref<128x128xbf16, #tpu.memory_space<vmem>>, %arg9: memref<1x128xf32, #tpu.memory_space<vmem>>, %arg10: memref<8x128xf32, #tpu.memory_space<vmem>>) attributes {dimension_semantics = [#tpu.dimension_semantics<parallel>], iteration_bounds = array<i64: 2>, scalar_prefetch = 0 : i64, scratch_operands = 0 : i64, tpu.core_type = #tpu.core_type<tc>, window_params = [{transform_indices = @transform_0, window_bounds = array<i64: 8, 32>}, {pipeline_mode = #tpu.pipeline_mode<synchronous>, transform_indices = @transform_1, window_bounds = array<i64: 32, 128>}, {pipeline_mode = #tpu.pipeline_mode<synchronous>, transform_indices = @transform_2, window_bounds = array<i64: 1, 128>}, {pipeline_mode = #tpu.pipeline_mode<synchronous>, transform_indices = @transform_3, window_bounds = array<i64: 128, 128>}, {pipeline_mode = #tpu.pipeline_mode<synchronous>, transform_indices = @transform_4, window_bounds = array<i64: 1, 128>}, {pipeline_mode = #tpu.pipeline_mode<synchronous>, transform_indices = @transform_5, window_bounds = array<i64: 128, 128>}, {pipeline_mode = #tpu.pipeline_mode<synchronous>, transform_indices = @transform_6, window_bounds = array<i64: 1, 128>}, {pipeline_mode = #tpu.pipeline_mode<synchronous>, transform_indices = @transform_7, window_bounds = array<i64: 128, 128>}, {pipeline_mode = #tpu.pipeline_mode<synchronous>, transform_indices = @transform_8, window_bounds = array<i64: 1, 128>}, {transform_indices = @transform_9, window_bounds = array<i64: 8, 128>}]} {
    %c0 = arith.constant 0 : index
    %c0_0 = arith.constant 0 : index
    %0 = vector.load %arg1[%c0, %c0_0] : memref<8x32xf32, #tpu.memory_space<vmem>>, vector<8x32xf32>
    %c0_1 = arith.constant 0 : index
    %c0_2 = arith.constant 0 : index
    %1 = vector.load %arg2[%c0_1, %c0_2] : memref<32x128xbf16, #tpu.memory_space<vmem>>, vector<32x128xbf16>
    %c0_3 = arith.constant 0 : index
    %c0_4 = arith.constant 0 : index
    %2 = vector.load %arg3[%c0_3, %c0_4] : memref<1x128xf32, #tpu.memory_space<vmem>>, vector<1x128xf32>
    %3 = arith.truncf %0 : vector<8x32xf32> to vector<8x32xbf16>
    %cst = arith.constant dense<0.000000e+00> : vector<8x128xf32>
    %4 = tpu.matmul %3, %1, %cst {dimension_numbers = #tpu.dot_dimension_numbers<[1], [0], [0], [1], [0, 0, 1, 1], [], []>} : vector<8x32xbf16>, vector<32x128xbf16>, vector<8x128xf32> -> vector<8x128xf32>
    %5 = vector.broadcast %2 : vector<1x128xf32> to vector<8x128xf32>
    %6 = arith.addf %4, %5 : vector<8x128xf32>
    %cst_5 = arith.constant 0.000000e+00 : f32
    %7 = vector.broadcast %cst_5 : f32 to vector<8x128xf32>
    %8 = arith.maximumf %6, %7 : vector<8x128xf32>
    %c0_6 = arith.constant 0 : index
    %c0_7 = arith.constant 0 : index
    %9 = vector.load %arg4[%c0_6, %c0_7] : memref<128x128xbf16, #tpu.memory_space<vmem>>, vector<128x128xbf16>
    %c0_8 = arith.constant 0 : index
    %c0_9 = arith.constant 0 : index
    %10 = vector.load %arg5[%c0_8, %c0_9] : memref<1x128xf32, #tpu.memory_space<vmem>>, vector<1x128xf32>
    %11 = arith.truncf %8 : vector<8x128xf32> to vector<8x128xbf16>
    %cst_10 = arith.constant dense<0.000000e+00> : vector<8x128xf32>
    %12 = tpu.matmul %11, %9, %cst_10 {dimension_numbers = #tpu.dot_dimension_numbers<[1], [0], [0], [1], [0, 0, 1, 1], [], []>} : vector<8x128xbf16>, vector<128x128xbf16>, vector<8x128xf32> -> vector<8x128xf32>
    %13 = vector.broadcast %10 : vector<1x128xf32> to vector<8x128xf32>
    %14 = arith.addf %12, %13 : vector<8x128xf32>
    %cst_11 = arith.constant 0.000000e+00 : f32
    %15 = vector.broadcast %cst_11 : f32 to vector<8x128xf32>
    %16 = arith.maximumf %14, %15 : vector<8x128xf32>
    %c0_12 = arith.constant 0 : index
    %c0_13 = arith.constant 0 : index
    %17 = vector.load %arg6[%c0_12, %c0_13] : memref<128x128xbf16, #tpu.memory_space<vmem>>, vector<128x128xbf16>
    %c0_14 = arith.constant 0 : index
    %c0_15 = arith.constant 0 : index
    %18 = vector.load %arg7[%c0_14, %c0_15] : memref<1x128xf32, #tpu.memory_space<vmem>>, vector<1x128xf32>
    %19 = arith.truncf %16 : vector<8x128xf32> to vector<8x128xbf16>
    %cst_16 = arith.constant dense<0.000000e+00> : vector<8x128xf32>
    %20 = tpu.matmul %19, %17, %cst_16 {dimension_numbers = #tpu.dot_dimension_numbers<[1], [0], [0], [1], [0, 0, 1, 1], [], []>} : vector<8x128xbf16>, vector<128x128xbf16>, vector<8x128xf32> -> vector<8x128xf32>
    %21 = vector.broadcast %18 : vector<1x128xf32> to vector<8x128xf32>
    %22 = arith.addf %20, %21 : vector<8x128xf32>
    %cst_17 = arith.constant 0.000000e+00 : f32
    %23 = vector.broadcast %cst_17 : f32 to vector<8x128xf32>
    %24 = arith.maximumf %22, %23 : vector<8x128xf32>
    %c0_18 = arith.constant 0 : index
    %c0_19 = arith.constant 0 : index
    %25 = vector.load %arg8[%c0_18, %c0_19] : memref<128x128xbf16, #tpu.memory_space<vmem>>, vector<128x128xbf16>
    %c0_20 = arith.constant 0 : index
    %c0_21 = arith.constant 0 : index
    %26 = vector.load %arg9[%c0_20, %c0_21] : memref<1x128xf32, #tpu.memory_space<vmem>>, vector<1x128xf32>
    %27 = arith.truncf %24 : vector<8x128xf32> to vector<8x128xbf16>
    %cst_22 = arith.constant dense<0.000000e+00> : vector<8x128xf32>
    %28 = tpu.matmul %27, %25, %cst_22 {dimension_numbers = #tpu.dot_dimension_numbers<[1], [0], [0], [1], [0, 0, 1, 1], [], []>} : vector<8x128xbf16>, vector<128x128xbf16>, vector<8x128xf32> -> vector<8x128xf32>
    %29 = vector.broadcast %26 : vector<1x128xf32> to vector<8x128xf32>
    %30 = arith.addf %28, %29 : vector<8x128xf32>
    %31 = arith.negf %30 : vector<8x128xf32>
    %32 = math.exp %31 : vector<8x128xf32>
    %cst_23 = arith.constant 1.000000e+00 : f32
    %33 = vector.broadcast %cst_23 : f32 to vector<8x128xf32>
    %34 = arith.addf %33, %32 : vector<8x128xf32>
    %35 = arith.divf %33, %34 : vector<8x128xf32>
    %c0_24 = arith.constant 0 : index
    %c0_25 = arith.constant 0 : index
    %36 = vector.load %arg10[%c0_24, %c0_25] : memref<8x128xf32, #tpu.memory_space<vmem>>, vector<8x128xf32>
    tpu.vector_store %arg10[%c0_24, %c0_25], %35 {strides = array<i32>} : memref<8x128xf32, #tpu.memory_space<vmem>>, vector<8x128xf32>,
    return
  }
  func.func @transform_0(%arg0: i32) -> (i32, i32) {
    %c0_i32 = arith.constant 0 : i32
    %c0_i32_0 = arith.constant 0 : i32
    return %arg0, %c0_i32 : i32, i32
  }
  func.func @transform_1(%arg0: i32) -> (i32, i32) {
    %c0_i32 = arith.constant 0 : i32
    %c0_i32_0 = arith.constant 0 : i32
    %c0_i32_1 = arith.constant 0 : i32
    return %c0_i32, %c0_i32_0 : i32, i32
  }
  func.func @transform_2(%arg0: i32) -> (i32, i32) {
    %c0_i32 = arith.constant 0 : i32
    %c0_i32_0 = arith.constant 0 : i32
    %c0_i32_1 = arith.constant 0 : i32
    return %c0_i32, %c0_i32_0 : i32, i32
  }
  func.func @transform_3(%arg0: i32) -> (i32, i32) {
    %c0_i32 = arith.constant 0 : i32
    %c0_i32_0 = arith.constant 0 : i32
    %c0_i32_1 = arith.constant 0 : i32
    return %c0_i32, %c0_i32_0 : i32, i32
  }
  func.func @transform_4(%arg0: i32) -> (i32, i32) {
    %c0_i32 = arith.constant 0 : i32
    %c0_i32_0 = arith.constant 0 : i32
    %c0_i32_1 = arith.constant 0 : i32
    return %c0_i32, %c0_i32_0 : i32, i32
  }
  func.func @transform_5(%arg0: i32) -> (i32, i32) {
    %c0_i32 = arith.constant 0 : i32
    %c0_i32_0 = arith.constant 0 : i32
    %c0_i32_1 = arith.constant 0 : i32
    return %c0_i32, %c0_i32_0 : i32, i32
  }
  func.func @transform_6(%arg0: i32) -> (i32, i32) {
    %c0_i32 = arith.constant 0 : i32
    %c0_i32_0 = arith.constant 0 : i32
    %c0_i32_1 = arith.constant 0 : i32
    return %c0_i32, %c0_i32_0 : i32, i32
  }
  func.func @transform_7(%arg0: i32) -> (i32, i32) {
    %c0_i32 = arith.constant 0 : i32
    %c0_i32_0 = arith.constant 0 : i32
    %c0_i32_1 = arith.constant 0 : i32
    return %c0_i32, %c0_i32_0 : i32, i32
  }
  func.func @transform_8(%arg0: i32) -> (i32, i32) {
    %c0_i32 = arith.constant 0 : i32
    %c0_i32_0 = arith.constant 0 : i32
    %c0_i32_1 = arith.constant 0 : i32
    return %c0_i32, %c0_i32_0 : i32, i32
  }
  func.func @transform_9(%arg0: i32) -> (i32, i32) {
    %c0_i32 = arith.constant 0 : i32
    %c0_i32_0 = arith.constant 0 : i32
    return %arg0, %c0_i32 : i32, i32
  }
}

</mosaic_0001>

<bundles_post_ra>
// kernel: autoencoder_forward.1
= control target key start
LH: loop header
LB: loop body
LE: loop exit
PB: predicated region body
PF: predicated region fallthrough
CT: control target
= control target key end

     0   :  { %14 = vsyncpa [#allocation3], 0  ;;  %s1617_s0 = inlined_call_operand.vmem [shape: f32[16,32], index: 0, kind: input, shape index: {}]   ;;  %s1618_s1 = inlined_call_operand.vmem [shape: bf16[32,128], index: 1, kind: input, shape index: {}]   ;;  %s1619_s2 = inlined_call_operand.vmem [shape: f32[1,128], index: 2, kind: input, shape index: {}]   ;;  %s1620_s3 = inlined_call_operand.hbm [shape: bf16[128,128], index: 3, kind: input, shape index: {}]   ;;  %s1621_s4 = inlined_call_operand.vmem [shape: f32[1,128], index: 4, kind: input, shape index: {}]   ;;  %s1622_s5 = inlined_call_operand.hbm [shape: bf16[128,128], index: 5, kind: input, shape index: {}]   ;;  %s1623_s6 = inlined_call_operand.vmem [shape: f32[1,128], index: 6, kind: input, shape index: {}]   ;;  %s1624_s7 = inlined_call_operand.hbm [shape: bf16[128,128], index: 7, kind: input, shape index: {}]   ;;  %s1625_s8 = inlined_call_operand.vmem [shape: f32[1,128], index: 8, kind: input, shape index: {}]   ;;  %s1626_s9 = inlined_call_operand.hbm [shape: f32[16,128], index: 9, kind: output, shape index: {}]  }
   0x1   :  { %15 = vsyncpa [#allocation6], 0 }
   0x2   :  { %16 = vsyncpa [#allocation4], 0 }
   0x3   :  { %18 = vsyncpa [#allocation4 + $0x1], 0  ;;  %s1356_s30 = smov 0   ;;  %s1358_s10 = smov 0  }
   0x4   :  { %s1360_s11 = smov 0   ;;  %s1362_s12 = smov 0  }
   0x5 LB: > { %1635 = sst [smem:[#allocation12_spill]] %s1284_s30  ;;  %s1377_s13 = sadd.s32 4294967295, %s1296_s12   ;;  %s1296_s12 = sphi %s1362_s12, %s1654_s12   ;;  %s1292_s11 = sphi %s1360_s11, %s1659_s11   ;;  %s1288_s10 = sphi %s1358_s10, %s1658_s10   ;;  %s1284_s30 = sphi %s1356_s30, %s1657_s30  }
   0x6   : > { %1636 = sst [smem:[#allocation13_spill]] %s1292_s11  ;;  %s892_s14 = sadd.s32 4294967294, %s1296_s12  }
   0x7   : > { %s1381_s15 = sadd.s32 1, %s1296_s12   ;;  %s225_s16 = sadd.s32 1, %s1292_s11 }
   0x8   : > { %1637 = sst [smem:[#allocation14_spill]] %s1381_s15  ;;  %s222_s17 = ssub.s32 %s1296_s12, %s1381_s15 }
   0x9   : > { %p235_p0 = scmp.ne.s32.totalorder %s1292_s11, %s1288_s10  ;;  %p223_p1 = scmp.eq.s32.totalorder %s222_s17, 0 }
   0xa   : > { %p236_p2 = scmp.eq.s32.totalorder %s1377_s13, 1  ;;  %p241_p3 = scmp.ne.s32.totalorder %s1288_s10, %s1284_s30 }
   0xb   : > { %p242_p4 = scmp.eq.s32.totalorder %s892_s14, 1  ;;  %p893_p7 = scmp.ge.s32.totalorder %s1296_s12, 1 }
   0xc   : > { %s1392_s18 = scalar_select %p223_p1, %s1292_s11, %s225_s16  }
   0xd   : > { %p1394_p5 = por %p236_p2, %p235_p0  ;;  %p1398_p6 = por %p242_p4, %p241_p3 }
   0xe   : > { %1638 = sst [smem:[#allocation15_spill]] %s1392_s18  ;;  %p249_p8 = scmp.lt.s32.totalorder %s1296_s12, 3 }
   0xf   : > { %s1639_s19 = scalar_select %p1394_p5, 1, 0 }
  0x10   : > { %s1640_s20 = scalar_select %p1398_p6, 1, 0 }
  0x11   : > { %p1627_p9 = scmp.eq.s32.totalorder %s1377_s13, 0  ;;  %p1405_p10 = pnand %p893_p7, %p249_p8 }
  0x12   : > { %1641 = sst [smem:[#allocation16_spill]] %s1640_s20  ;;  %s1298_s22 = smov [#allocation5]  }
  0x13   : > { %s1642_s21 = scalar_select %p1405_p10, 1, 0 }
  0x14   : > { %p1052_p11 = pneg %p1405_p10  ;;  %s283_s23 = sshll.u32 %s1298_s22, 4  ;;  %s1411_s23 = int_to_ptr.vmem [resolvable:$true] %s283_s23 }
  0x15   : > { %s1299_s25 = smov [#allocation2]   ;;  %s1300_s27 = smov [#allocation7]  }
  0x16   : > { %p1415_p12 = pnand %p1627_p9, %p1052_p11  ;;  %s267_s26 = sshll.u32 %s1299_s25, 4  ;;  %s1419_s26 = int_to_ptr.vmem [resolvable:$true] %s267_s26 }
  0x17   : > { %s1421_s28 = sshll.u32 %s1300_s27, 4  ;;  %s1142_s16 = scalar_lea.hbm %s1622_s5, 1024  ;;  %s300_s28 = int_to_ptr.vmem [resolvable:$true] %s1421_s28 }
  0x18   : > { %p1143_p13 = scmp.ne.s32.totalorder %s1622_s5, %s1142_s16  ;;  %p1431_p0 = pneg %p1415_p12 }
  0x19   : > { %p1149_p3 = scmp.lt.u32.totalorder %s1142_s16, %s1622_s5 }
  0x1a   : > { %p1145_p1 = pnand %p1431_p0, %p1143_p13 }
  0x1c   : > { %p1146_p2 = pneg %p1145_p1 }
  0x1e   : > { %p1151_p4 = pnand %p1149_p3, %p1146_p2 }
  0x20   : > { %1154 = shalt.err (!%p1151_p4)
}
  0x21   : > { %s1155_s29 = scalar_lea.vmem %s1411_s23, 1024  ;;  %p1163_p9 = scmp.lt.s32.totalorder %s1411_s23, %s1411_s23 }
  0x22   : > { %p1156_p7 = scmp.ne.s32.totalorder %s1411_s23, %s1155_s29  ;;  %p1164_p6 = scmp.lt.s32.totalorder %s1155_s29, %s1155_s29 }
  0x24   : > { %p1158_p8 = pnand %p1156_p7, %p1431_p0  ;;  %p1165_p13 = por %p1164_p6, %p1163_p9 }
  0x26   : > { %p1159_p11 = pneg %p1158_p8 }
  0x28   : > { %p1166_p1 = pnand %p1165_p13, %p1159_p11 }
  0x2a   : > { %1169 = shalt.err (!%p1166_p1)
}
  0x2b   : > { %s1301_s14 = smov 64   ;;  %s1302_s16 = smov 4  }
  0x2c   : > { %1058 = dma.hbm_to_vmem [thread:$0]  (!%p1415_p12), %s1622_s5, 1024, %s1411_s23, [#allocation6], %s1301_s14, %s1301_s14, %s1302_s16  }
  0x2d   : > { %s1170_s29 = scalar_lea.hbm %s1620_s3, 1024 }
  0x2e   : > { %p1171_p6 = scmp.ne.s32.totalorder %s1620_s3, %s1170_s29  ;;  %p1177_p3 = scmp.lt.u32.totalorder %s1170_s29, %s1620_s3 }
  0x30   : > { %p1173_p9 = pnand %p1171_p6, %p1431_p0 }
  0x32   : > { %p1174_p2 = pneg %p1173_p9 }
  0x34   : > { %p1179_p4 = pnand %p1177_p3, %p1174_p2 }
  0x36   : > { %1182 = shalt.err (!%p1179_p4)
}
  0x37   : > { %s1183_s23 = scalar_lea.vmem %s1419_s26, 1024  ;;  %p1191_p13 = scmp.lt.s32.totalorder %s1419_s26, %s1419_s26 }
  0x38   : > { %p1184_p7 = scmp.ne.s32.totalorder %s1419_s26, %s1183_s23  ;;  %p1192_p1 = scmp.lt.s32.totalorder %s1183_s23, %s1183_s23 }
  0x3a   : > { %p1186_p8 = pnand %p1184_p7, %p1431_p0  ;;  %p1193_p6 = por %p1192_p1, %p1191_p13 }
  0x3c   : > { %p1187_p11 = pneg %p1186_p8 }
  0x3e   : > { %p1194_p9 = pnand %p1193_p6, %p1187_p11 }
  0x40   : > { %1197 = shalt.err (!%p1194_p9)
}
  0x41   : > { %1055 = dma.hbm_to_vmem [thread:$0]  (!%p1415_p12), %s1620_s3, 1024, %s1419_s26, [#allocation3], %s1301_s14, %s1301_s14, %s1302_s16  }
  0x42   : > { %s1198_s17 = scalar_lea.hbm %s1624_s7, 1024 }
  0x43   : > { %p1199_p2 = scmp.ne.s32.totalorder %s1624_s7, %s1198_s17  ;;  %p1205_p7 = scmp.lt.u32.totalorder %s1198_s17, %s1624_s7 }
  0x45   : > { %p1201_p3 = pnand %p1199_p2, %p1431_p0 }
  0x47   : > { %p1202_p4 = pneg %p1201_p3 }
  0x49   : > { %p1207_p8 = pnand %p1205_p7, %p1202_p4 }
  0x4b   : > { %1210 = shalt.err (!%p1207_p8)
}
  0x4c   : > { %s1211_s23 = scalar_lea.vmem %s300_s28, 1024  ;;  %p1219_p6 = scmp.lt.s32.totalorder %s300_s28, %s300_s28 }
  0x4d   : > { %p1212_p11 = scmp.ne.s32.totalorder %s300_s28, %s1211_s23  ;;  %p1220_p9 = scmp.lt.s32.totalorder %s1211_s23, %s1211_s23 }
  0x4f   : > { %p1214_p13 = pnand %p1212_p11, %p1431_p0  ;;  %p1221_p5 = por %p1220_p9, %p1219_p6 }
  0x51   : > { %p1215_p1 = pneg %p1214_p13 }
  0x53   : > { %p1222_p10 = pnand %p1221_p5, %p1215_p1 }
  0x55   : > { %1225 = shalt.err (!%p1222_p10)
}
  0x56   : > { %1061 = dma.hbm_to_vmem [thread:$0]  (!%p1415_p12), %s1624_s7, 1024, %s300_s28, [#allocation6], %s1301_s14, %s1301_s14, %s1302_s16  }
  0x57   : > { %p1645_p2 = scmp.ne.s32.totalorder %s1642_s21, 0 }
  0x58   : > { %p1646_p0 = scmp.eq.s32.totalorder (!%p1645_p2), %s1377_s13, 0 }
  0x59   : > { %325 = sbr.rel (%p1645_p2) target bundleno = 1018 (0x3fa), region = 56 }
  0x60   : > { %1271 = dma.done.wait (%p1646_p0), [#allocation3], 1024   ;;  %p1647_p3 = pmov %p1646_p0 }
  0x61   : > { %p1648_p5 = pmov %p1646_p0 }
  0x62   : > { %1273 = vsyncadd (%p1647_p3), [#allocation3], 4294966272 }
  0x63   : > { %1275 = dma.done.wait (%p1648_p5), [#allocation6], 2048   ;;  %p1649_p10 = pmov %p1646_p0 }
  0x64   : > { %p368_p4 = scmp.lt.s32.totalorder %s1377_s13, 1  ;;  %v1303_v0 = vmov 0.0   ;;  %vm1304_vm0 = vmmov 0   ;;  %v1112_v1 = vld [vmem:[%s1618_s1] sm:$0xff]   ;;  %v1113_v2 = vld [vmem:[%s1618_s1 + $0x8] sm:$0xff]   ;;  %vm398_vm1 = vcmask 261120  }
  0x65   : > { %1277 = vsyncadd (%p1649_p10), [#allocation6], 4294965248  ;;  %970 = vmatprep.subr.bf16.mxu0 %v1303_v0  ;;  %974 = vmatprep.mubr.msk.bf16.mxu0 %vm1304_vm0, %v1303_v0  ;;  %v1114_v4 = vld [vmem:[#allocation2] sm:$0xff]   ;;  %v1115_v6 = vld [vmem:[#allocation2 + $0x8] sm:$0xff]   ;;  %s937_s24 = sshll.u32 %s1377_s13, 7  ;;  %p1650_p7 = scmp.ne.s32.totalorder %s1639_s19, 0 }
  0x66   : > { %s369_s18 = scalar_select %p368_p4, %s1377_s13, 1  ;;  %978 = vmatprep.subr.bf16.mxu1 %v1303_v0  ;;  %994 = vmatprep.mubr.msk.bf16.mxu1 %vm1304_vm0, %v1303_v0  ;;  %v1116_v7 = vld [vmem:[#allocation2 + $0x10] sm:$0xff]   ;;  %v1117_v8 = vld [vmem:[#allocation2 + $0x18] sm:$0xff]   ;;  %v1118_v9 = vld [vmem:[#allocation2 + $0x20] sm:$0xff]  }
  0x67   : > { %971 = vmatpush3.bf16.msra.mxu0 %v1112_v1  ;;  %979 = vmatpush3.bf16.msra.mxu1 %v1114_v4  ;;  %v1119_v10 = vld [vmem:[#allocation2 + $0x28] sm:$0xff]   ;;  %v1120_v11 = vld [vmem:[#allocation2 + $0x30] sm:$0xff]   ;;  %v1121_v12 = vld [vmem:[#allocation2 + $0x38] sm:$0xff]   ;;  %s1575_s15 = scalar_lea.hbm %s1626_s9, %s937_s24  ;;  %s1305_s13 = smov [#allocation8]  }
  0x68   : > { %s903_s21 = sshll.u32 %s369_s18, 3  ;;  %972 = vmatprep.subr.bf16.mxu0 %v1303_v0  ;;  %980 = vmatprep.subr.bf16.mxu1 %v1303_v0  ;;  %v1122_v13 = vld [vmem:[#allocation5] sm:$0xff]   ;;  %v1123_v14 = vld [vmem:[#allocation5 + $0x8] sm:$0xff]   ;;  %v1124_v15 = vld [vmem:[#allocation5 + $0x10] sm:$0xff]   ;;  %s365_s18 = sand.u32 1, %s1288_s10  }
  0x69   : > { %s371_s14 = scalar_lea.vmem %s1617_s0, %s903_s21  ;;  %v1125_v16 = vld [vmem:[#allocation5 + $0x18] sm:$0xff]   ;;  %v1126_v17 = vld [vmem:[#allocation5 + $0x20] sm:$0xff]   ;;  %v1127_v18 = vld [vmem:[#allocation5 + $0x28] sm:$0xff]   ;;  %s902_s21 = sshll.u32 %s365_s18, 3 }
  0x6a   : > { %v373_v3 = vld [vmem:[%s371_s14] sm:$0xff]  ;;  %v1128_v27 = vld [vmem:[#allocation5 + $0x30] sm:$0xff]   ;;  %v1129_v28 = vld [vmem:[#allocation5 + $0x38] sm:$0xff]   ;;  %s367_s28 = scalar_lea.vmem [#allocation8], %s902_s21  ;;  %s789_s20 = scalar_lea.sflag [#allocation4], %s365_s18 }
  0x6b   : > { %v379_v5 = vpack.c.bf16 %v373_v3, %v373_v3  ;;  %973 = vmatpush3.bf16.msra.mxu0 %v1113_v2  ;;  %981 = vmatpush3.bf16.msra.mxu1 %v1115_v6  ;;  %v904_v19 = vld [vmem:[%s1619_s2] ss:$0 sm:$0xff]  ;;  %v1131_v30 = vld [vmem:[#allocation7 + $0x8] sm:$0xff]   ;;  %v1132_v31 = vld [vmem:[#allocation7 + $0x10] sm:$0xff]   ;;  %s802_s14 = sshll.u32 %s367_s28, 4  ;;  %s1230_s22 = sshll.u32 %s1305_s13, 4  ;;  %s1577_s14 = int_to_ptr.vmem [resolvable:$true] %s802_s14  ;;  %s1231_s22 = int_to_ptr.vmem [resolvable:$false] %s1230_s22 }
  0x6c   : > { %998 = vmatprep.subr.bf16.mxu0 %v1303_v0  ;;  %982 = vmatprep.subr.bf16.mxu1 %v1303_v0  ;;  %v1130_v29 = vld [vmem:[#allocation7] sm:$0xff]   ;;  %v1133_v32 = vld [vmem:[#allocation7 + $0x18] sm:$0xff]   ;;  %v1135_v34 = vld [vmem:[#allocation7 + $0x28] sm:$0xff]   ;;  %s1226_s17 = scalar_lea.vmem %s1577_s14, 128  ;;  %s1232_s25 = scalar_lea.vmem %s1231_s22, 256 }
  0x6d   : > { %v1134_v33 = vld [vmem:[#allocation7 + $0x20] sm:$0xff]   ;;  %v1136_v43 = vld [vmem:[#allocation7 + $0x30] sm:$0xff]   ;;  %v1137_v44 = vld [vmem:[#allocation7 + $0x38] sm:$0xff]   ;;  %p1227_p12 = scmp.ne.s32.totalorder %s1577_s14, %s1226_s17  ;;  %p1233_p13 = scmp.lt.s32.totalorder %s1577_s14, %s1231_s22 }
  0x6e   : > { %975 = vmatmul.mubr.msk.bf16.vlgmr.msra.gmra.mrb[0].mxu0 %vm398_vm1, %v379_v5  ;;  %v908_v35 = vld [vmem:[%s1621_s4] ss:$0 sm:$0xff]  ;;  %p1234_p1 = scmp.lt.s32.totalorder %s1232_s25, %s1226_s17 }
  0x6f   : > { %1014 = vmatprep.mubr.msk.bf16.mxu0 %vm1304_vm0, %v1303_v0  ;;  %983 = vmatpush3.bf16.msra.mxu1 %v1116_v7  ;;  %v917_v45 = vld [vmem:[%s1623_s6] ss:$0 sm:$0xff]  ;;  %p1228_p8 = pnand %p1227_p12, %p1650_p7 }
  0x70   : > { %984 = vmatprep.subr.bf16.mxu1 %v1303_v0  ;;  %999 = vmatpush3.bf16.msra.mxu0 %v1122_v13  ;;  %v926_v53 = vld [vmem:[%s1625_s8] ss:$0 sm:$0xff]  ;;  %p1235_p6 = por %p1234_p1, %p1233_p13 }
  0x71   : > { %1000 = vmatprep.subr.bf16.mxu0 %v1303_v0  ;;  %p1229_p11 = pneg %p1228_p8 }
  0x73   : > { %985 = vmatpush3.bf16.msra.mxu1 %v1117_v8  ;;  %p1236_p9 = pnand %p1235_p6, %p1229_p11 }
  0x74   : > { %986 = vmatprep.subr.bf16.mxu1 %v1303_v0  ;;  %1001 = vmatpush3.bf16.msra.mxu0 %v1123_v14 }
  0x75   : > { %1002 = vmatprep.subr.bf16.mxu0 %v1303_v0 }
  0x77   : > { %987 = vmatpush3.bf16.msra.mxu1 %v1118_v9 }
  0x78   : > { %988 = vmatprep.subr.bf16.mxu1 %v1303_v0  ;;  %1003 = vmatpush3.bf16.msra.mxu0 %v1124_v15 }
  0x79   : > { %1004 = vmatprep.subr.bf16.mxu0 %v1303_v0 }
  0x7b   : > { %989 = vmatpush3.bf16.msra.mxu1 %v1119_v10 }
  0x7c   : > { %990 = vmatprep.subr.bf16.mxu1 %v1303_v0  ;;  %1005 = vmatpush3.bf16.msra.mxu0 %v1125_v16 }
  0x7d   : > { %1006 = vmatprep.subr.bf16.mxu0 %v1303_v0 }
  0x7f   : > { %991 = vmatpush3.bf16.msra.mxu1 %v1120_v11 }
  0x80   : > { %992 = vmatprep.subr.bf16.mxu1 %v1303_v0  ;;  %1007 = vmatpush3.bf16.msra.mxu0 %v1126_v17 }
  0x81   : > { %1008 = vmatprep.subr.bf16.mxu0 %v1303_v0 }
  0x83   : > { %993 = vmatpush3.bf16.msra.mxu1 %v1121_v12 }
  0x84   : > { %1018 = vmatprep.subr.bf16.mxu1 %v1303_v0  ;;  %1009 = vmatpush3.bf16.msra.mxu0 %v1127_v18 }
  0x85   : > { %1010 = vmatprep.subr.bf16.mxu0 %v1303_v0 }
  0x88   : > { %1011 = vmatpush3.bf16.msra.mxu0 %v1128_v27 }
  0x89   : > { %1012 = vmatprep.subr.bf16.mxu0 %v1303_v0 }
  0x8c   : > { %1013 = vmatpush3.bf16.msra.mxu0 %v1129_v28 }
 0x141   : > { %v436_v20 = vpop.f32.mrb[0].mxu0 }
 0x142   : > { %v437_v21 = vadd.f32 %v904_v19, %v436_v20  ;;  %v976_v22 = vpop.f32.mrb[1].mxu0 }
 0x143   : > { %v439_v23 = vpop.f32.mrb[2].mxu0 }
 0x144   : > { %v442_v24 = vmax.f32 %v437_v21, 0.0  ;;  %v977_v25 = vpop.f32.mrb[3].mxu0 }
 0x146   : > { %v460_v26 = vpack.c.bf16 %v442_v24, %v442_v24 }
 0x148   : > { %995 = vmatmul.mubr.bf16.vlgmr.msra.gmra.mrb[0].mxu1 %v460_v26 }
 0x149   : > { %1034 = vmatprep.mubr.msk.bf16.mxu1 %vm1304_vm0, %v1303_v0  ;;  %1019 = vmatpush3.bf16.msra.mxu1 %v1130_v29 }
 0x14a   : > { %1020 = vmatprep.subr.bf16.mxu1 %v1303_v0 }
 0x14d   : > { %1021 = vmatpush3.bf16.msra.mxu1 %v1131_v30 }
 0x14e   : > { %1022 = vmatprep.subr.bf16.mxu1 %v1303_v0 }
 0x151   : > { %1023 = vmatpush3.bf16.msra.mxu1 %v1132_v31 }
 0x152   : > { %1024 = vmatprep.subr.bf16.mxu1 %v1303_v0 }
 0x155   : > { %1025 = vmatpush3.bf16.msra.mxu1 %v1133_v32 }
 0x156   : > { %1026 = vmatprep.subr.bf16.mxu1 %v1303_v0 }
 0x159   : > { %1027 = vmatpush3.bf16.msra.mxu1 %v1134_v33 }
 0x15a   : > { %1028 = vmatprep.subr.bf16.mxu1 %v1303_v0 }
 0x15d   : > { %1029 = vmatpush3.bf16.msra.mxu1 %v1135_v34 }
 0x15e   : > { %1030 = vmatprep.subr.bf16.mxu1 %v1303_v0 }
 0x161   : > { %1031 = vmatpush3.bf16.msra.mxu1 %v1136_v43 }
 0x162   : > { %1032 = vmatprep.subr.bf16.mxu1 %v1303_v0 }
 0x165   : > { %1033 = vmatpush3.bf16.msra.mxu1 %v1137_v44 }
 0x21b   : > { %v549_v36 = vpop.f32.mrb[0].mxu1 }
 0x21c   : > { %v550_v37 = vadd.f32 %v908_v35, %v549_v36  ;;  %v996_v38 = vpop.f32.mrb[1].mxu1 }
 0x21d   : > { %v552_v39 = vpop.f32.mrb[2].mxu1 }
 0x21e   : > { %v555_v40 = vmax.f32 %v550_v37, 0.0  ;;  %v997_v41 = vpop.f32.mrb[3].mxu1 }
 0x220   : > { %v573_v42 = vpack.c.bf16 %v555_v40, %v555_v40 }
 0x222   : > { %1015 = vmatmul.mubr.bf16.vlgmr.msra.gmra.mrb[4].mxu0 %v573_v42 }
 0x2f5   : > { %v662_v46 = vpop.f32.mrb[4].mxu0 }
 0x2f6   : > { %v663_v47 = vadd.f32 %v917_v45, %v662_v46  ;;  %v1016_v48 = vpop.f32.mrb[5].mxu0 }
 0x2f7   : > { %v665_v49 = vpop.f32.mrb[6].mxu0 }
 0x2f8   : > { %v668_v50 = vmax.f32 %v663_v47, 0.0  ;;  %v1017_v51 = vpop.f32.mrb[7].mxu0 }
 0x2fa   : > { %v686_v52 = vpack.c.bf16 %v668_v50, %v668_v50 }
 0x2fc   : > { %1035 = vmatmul.mubr.bf16.vlgmr.msra.gmra.mrb[4].mxu1 %v686_v52 }
 0x3cf   : > { %v775_v54 = vpop.f32.mrb[4].mxu1 }
 0x3d0   : > { %v776_v55 = vadd.f32 %v926_v53, %v775_v54  ;;  %v1036_v56 = vpop.f32.mrb[5].mxu1 }
 0x3d1   : > { %v778_v57 = vpop.f32.mrb[6].mxu1 }
 0x3d2   : > { %v935_v58 = vmul.f32 -1.442695, %v776_v55  ;;  %v1037_v59 = vpop.f32.mrb[7].mxu1 }
 0x3d4   : > { %1138 = vpow2.f32 %v935_v58 }
 0x3de   : > { %v1139_v60 = vpop.eup %1138 }
 0x3df   : > { %v784_v61 = vadd.f32 1.0, %v1139_v60 }
 0x3e1   : > { %1140 = vrcp.f32 %v784_v61 }
 0x3eb   : > { %v1141_v62 = vpop.eup %1140 }
 0x3ec   : > { %787 = vst [vmem:[%s367_s28] sm:$0xff] %v1141_v62 }
 0x3ed   : > { %1239 = shalt.err (!%p1236_p9)
}
 0x3ee   : > { %s1240_s27 = scalar_lea.hbm %s1575_s15, 128  ;;  %s1244_s26 = scalar_lea.hbm %s1626_s9, 256 }
 0x3ef   : > { %p1241_p2 = scmp.ne.s32.totalorder %s1575_s15, %s1240_s27  ;;  %p1245_p5 = scmp.lt.u32.totalorder %s1575_s15, %s1626_s9 }
 0x3f0   : > { %p1246_p10 = scmp.lt.u32.totalorder %s1244_s26, %s1240_s27  ;;  %p1248_p12 = scmp.lt.u32.totalorder %s1240_s27, %s1575_s15 }
 0x3f1   : > { %p1242_p0 = pnand %p1241_p2, %p1650_p7 }
 0x3f2   : > { %p1247_p4 = por %p1246_p10, %p1245_p5 }
 0x3f3   : > { %p1243_p3 = pneg %p1242_p0 }
 0x3f4   : > { %p1249_p8 = por %p1248_p12, %p1247_p4 }
 0x3f6   : > { %p1250_p11 = pnand %p1249_p8, %p1243_p3 }
 0x3f8   : > { %1253 = shalt.err (!%p1250_p11)
}
 0x3f9   : > { %1050 = dma.vmem_to_hbm [thread:$0]  (%p1650_p7), %s1577_s14, 128, %s1575_s15, %s789_s20  }
 0x3fa PF: > { %s1651_s21 = sld [smem:[#allocation12_spill]]  ;;  %s1652_s24 = sld [smem:[#allocation16_spill]] }
 0x3fb   : > { %p1072_p13 = scmp.ge.s32.totalorder %s1296_s12, 2 }
 0x400   : > { %s814_s28 = sand.u32 1, %s1651_s21   ;;  %p1653_p1 = scmp.ne.s32.totalorder %s1652_s24, 0 }
 0x401   : > { %s815_s16 = scalar_lea.sflag [#allocation4], %s814_s28 }
 0x402   : > { %p1063_p6 = pnand %p1072_p13, %p1653_p1 }
 0x404   : > { %1279 = dma.done.wait (!%p1063_p6), %s815_s16, 128  }
 0x405   : > { %1281 = vsyncadd (!%p1063_p6), %s815_s16, 4294967168  ;;  %s1654_s12 = sld [smem:[#allocation14_spill]]  ;;  %s1655_s11 = sld [smem:[#allocation13_spill]] }
 0x406   : > { %s1656_s17 = sld [smem:[#allocation15_spill]]  ;;  %s1657_s30 = smov %s1288_s10 }
 0x40b   : > { %p21_p9 = scmp.ge.s32.totalorder %s1654_s12, 4   ;;  %s1658_s10 = smov %s1655_s11 }
 0x40c   : > { %s1659_s11 = smov %s1656_s17 }
 0x40d   :  { %23 = sbr.rel (!%p21_p9) target bundleno = 5 (0x5), region = 104 }
 0x414   :  { %820 = vsyncpa [#allocation3], 1 }
 0x415   :  { %822 = vsyncpa [#allocation3 + $0x1], 1 }
 0x416   :  { %823 = vsyncpa [#allocation6], 1 }
 0x417   :  { %824 = vsyncpa [#allocation4], 1 }
 0x418   :  { %826 = vsyncpa [#allocation4 + $0x1], 1 }

</bundles_post_ra>
